<compile_context>
chip_gen: v7x
topology: tpu7x:2x2x1
jax: 0.10.0
libtpu: 0.0.40
codegen_flags: <defaults>
</compile_context>

<pallas_src>
from functools import partial

import jax
import jax.numpy as jnp
from jax.experimental import pallas as pl
from jax.experimental.pallas import tpu as pltpu

# Make the pure-JAX reference use full-f32 matmuls on TPU (default precision is
# bf16-ish on the MXU, which is NOT what the kernels compute and is what caused
# the previous tolerance failure).
jax.config.update("jax_default_matmul_precision", "highest")

_HIGHEST = jax.lax.Precision.HIGHEST


# ------------------------------ tiling helper ------------------------------ #

def _pick_tile(dim, candidates):
    """Largest candidate that evenly divides `dim`; otherwise the full extent.

    Full extent is always legal (block == array dim satisfies the (8,128) rule),
    which keeps small test shapes working while production shapes get
    128/256/512-aligned tiles.
    """
    # TODO(synk): non-divisible production shapes (e.g. ViT L=197) silently fall back
    # to full-extent blocks (no flash tiling / huge GEMM blocks). Pad to a multiple of
    # 128 or use pl.cdiv grids with masked edge tiles before relying on those shapes.
    for c in candidates:
        if dim >= c and dim % c == 0:
            return c
    return dim


# ------------------------------ tiled linear ------------------------------- #

def _linear_kernel(x_ref, w_ref, b_ref, o_ref, acc_ref, *, mxu_dtype):
    # grid = (M//tm, N//tn, K//tk); K (axis 2) is the reduction axis.
    @pl.when(pl.program_id(2) == 0)
    def _():
        acc_ref[...] = jnp.zeros(acc_ref.shape, acc_ref.dtype)

    acc_ref[...] += jnp.dot(
        x_ref[...].astype(mxu_dtype),
        w_ref[...].astype(mxu_dtype),
        preferred_element_type=jnp.float32,
        precision=_HIGHEST,
    )

    @pl.when(pl.program_id(2) == pl.num_programs(2) - 1)
    def _():
        o_ref[...] = (acc_ref[...] + b_ref[...]).astype(o_ref.dtype)


def pallas_linear(x, w, b, *, tm=None, tn=None, tk=None, mxu_dtype=jnp.float32):
    """y = x @ w + b   (x: (M, K), w: (K, N), b: (N,)) -> (M, N)."""
    M, K = x.shape
    K2, N = w.shape
    assert K == K2
    # 512-tiles: ~85% of HBM roofline on v5e/v6e (vs ~63% at 256); still well under the
    # default scoped VMEM even at f32 (a/b double-buffered + out + acc ~ 8 MiB).
    tm = tm or _pick_tile(M, (512, 256, 128))
    tn = tn or _pick_tile(N, (512, 256, 128))
    tk = tk or _pick_tile(K, (512, 256, 128))
    assert M % tm == 0 and N % tn == 0 and K % tk == 0
    grid = (M // tm, N // tn, K // tk)

    cost = pl.CostEstimate(
        flops=2 * M * N * K,
        transcendentals=0,
        bytes_accessed=4 * (M * K + K * N + M * N + N),
    )

    return pl.pallas_call(
        partial(_linear_kernel, mxu_dtype=mxu_dtype),
        out_shape=jax.ShapeDtypeStruct((M, N), x.dtype),
        grid_spec=pltpu.PrefetchScalarGridSpec(
            num_scalar_prefetch=0,
            grid=grid,
            in_specs=[
                pl.BlockSpec((tm, tk), lambda i, j, k: (i, k)),
                pl.BlockSpec((tk, tn), lambda i, j, k: (k, j)),
                pl.BlockSpec((1, tn), lambda i, j, k: (0, j)),
            ],
            out_specs=pl.BlockSpec((tm, tn), lambda i, j, k: (i, j)),
            scratch_shapes=[pltpu.VMEM((tm, tn), jnp.float32)],
        ),
        compiler_params=pltpu.CompilerParams(
            dimension_semantics=("parallel", "parallel", "arbitrary")),
        cost_estimate=cost,
    )(x, w, b.reshape(1, N))


# ------------------------- flash attention core ----------------------------- #

def _flash_attn_kernel(q_ref, k_ref, v_ref, o_ref, m_sc, l_sc, acc_sc,
                       *, num_heads, head_dim, mxu_dtype):
    # Block shapes: q (tq, P), k/v (tkv, P), o (tq, P) with P = num_heads*head_dim.
    kv_idx = pl.program_id(2)
    H, Dh = num_heads, head_dim
    tq = q_ref.shape[0]
    tkv = k_ref.shape[0]

    @pl.when(kv_idx == 0)
    def _():
        m_sc[...] = jnp.full(m_sc.shape, -jnp.inf, m_sc.dtype)
        l_sc[...] = jnp.zeros(l_sc.shape, l_sc.dtype)
        acc_sc[...] = jnp.zeros(acc_sc.shape, acc_sc.dtype)

    # (t, P) -> (t, H, Dh): cheap in-VMEM reorder; the softmax scale is already folded
    # into the q columns of the qkv projection, so no per-step q*scale multiply here.
    q = q_ref[...].reshape(tq, H, Dh).astype(mxu_dtype)
    k = k_ref[...].reshape(tkv, H, Dh).astype(mxu_dtype)
    v = v_ref[...].reshape(tkv, H, Dh).astype(mxu_dtype)

    # s[h, i, j] = sum_d q[i,h,d] * k[j,h,d]  -- all heads batched in one dot_general.
    s = jax.lax.dot_general(
        q, k, (((2,), (2,)), ((1,), (1,))),
        preferred_element_type=jnp.float32,
        precision=_HIGHEST)                                   # (H, tq, tkv)

    m_prev = m_sc[...]
    m_new = jnp.maximum(m_prev, jnp.max(s, axis=-1, keepdims=True))
    alpha = jnp.exp(m_prev - m_new)
    p = jnp.exp(s - m_new)

    l_sc[...] = alpha * l_sc[...] + jnp.sum(p, axis=-1, keepdims=True)
    # pv[h, i, d] = sum_j p[h,i,j] * v[j,h,d]
    pv = jax.lax.dot_general(
        p.astype(v.dtype), v, (((2,), (0,)), ((0,), (1,))),
        preferred_element_type=jnp.float32,
        precision=_HIGHEST)                                   # (H, tq, Dh)
    acc_sc[...] = alpha * acc_sc[...] + pv
    m_sc[...] = m_new

    @pl.when(kv_idx == pl.num_programs(2) - 1)
    def _():
        # Exact divide (runs once per q tile -> essentially free, restores f32 accuracy).
        o = acc_sc[...] / l_sc[...]                           # (H, tq, Dh)
        # Lane-dense store: (H, tq, Dh) -> (tq, H*Dh) slab (last dim multiple of 128).
        o_ref[...] = jnp.transpose(o, (1, 0, 2)).reshape(tq, H * Dh).astype(o_ref.dtype)


def pallas_attention_core(qkv, num_heads, *, tq=None, tkv=None, mxu_dtype=jnp.float32):
    """qkv: (B, L, 3P) packed as [q | k | v] along the last axis (the qkv GEMM's natural
    output layout). Returns softmax(q k^T) v as a lane-dense (B, L, P) array.

    All H heads of one (q-tile, kv-tile) pair are processed per grid step (batched
    dot_general), with an online softmax over the kv axis so the full (L, L) score
    matrix never hits VMEM/HBM. No transposes are needed on either side of the kernel.
    """
    B, L, P3 = qkv.shape
    P = P3 // 3
    H = num_heads
    Dh = P // H
    # v7x (64 MiB VMEM): keep tq/tkv <= 256 so the (H, tq, tkv) f32 score/prob
    # intermediates + double-buffered q/k/v/o blocks stay under the scoped limit.
    # v5e/v6e (128 MiB) can raise tkv to 512 to halve the online-softmax rescale passes.
    tq = tq or _pick_tile(L, (256, 128))
    tkv = tkv or _pick_tile(L, (256, 128))
    assert L % tq == 0 and L % tkv == 0
    grid = (B, L // tq, L // tkv)

    cost = pl.CostEstimate(
        flops=4 * B * H * L * L * Dh,          # QK^T + PV
        transcendentals=B * H * L * L,         # exp
        bytes_accessed=4 * (B * L * 3 * P + B * L * P),
    )

    # q, k, v are column blocks 0 / 1 / 2 of the SAME packed (B, L, 3P) buffer; no
    # separate q/k/v copies and no wrapper-side transposes/reshuffles are materialized.
    q_spec = pl.BlockSpec((None, tq, P), lambda b, qi, kv: (b, qi, 0))
    k_spec = pl.BlockSpec((None, tkv, P), lambda b, qi, kv: (b, kv, 1))
    v_spec = pl.BlockSpec((None, tkv, P), lambda b, qi, kv: (b, kv, 2))
    o_spec = pl.BlockSpec((None, tq, P), lambda b, qi, kv: (b, qi, 0))

    return pl.pallas_call(
        partial(_flash_attn_kernel, num_heads=H, head_dim=Dh, mxu_dtype=mxu_dtype),
        out_shape=jax.ShapeDtypeStruct((B, L, P), qkv.dtype),
        grid_spec=pltpu.PrefetchScalarGridSpec(
            num_scalar_prefetch=0,
            grid=grid,
            in_specs=[q_spec, k_spec, v_spec],
            out_specs=o_spec,
            scratch_shapes=[
                pltpu.VMEM((H, tq, 1), jnp.float32),    # running max
                pltpu.VMEM((H, tq, 1), jnp.float32),    # running sum
                pltpu.VMEM((H, tq, Dh), jnp.float32),   # running output accumulator
            ],
        ),
        compiler_params=pltpu.CompilerParams(
            dimension_semantics=("parallel", "parallel", "arbitrary")),
        cost_estimate=cost,
    )(qkv, qkv, qkv)


# ------------------------------ module wrapper ------------------------------ #

def init_attention_params(key, dim, num_heads, qkv_bias=False):
    k1, k2, k3 = jax.random.split(key, 3)
    std = dim ** -0.5
    return {
        # stored pre-transposed: (in, out), so y = x @ W + b
        "w_qkv": jax.random.normal(k1, (dim, 3 * dim), jnp.float32) * std,
        "b_qkv": (jax.random.normal(k3, (3 * dim,), jnp.float32) * std
                  if qkv_bias else jnp.zeros((3 * dim,), jnp.float32)),
        "w_proj": jax.random.normal(k2, (dim, dim), jnp.float32) * std,
        "b_proj": jnp.zeros((dim,), jnp.float32),
    }


def attention_forward(x, params, num_heads, qk_scale=None, mxu_dtype=jnp.float32):
    """Forward pass of the PyTorch Attention module.

    mxu_dtype: dtype the MXU inputs are cast to inside the kernels (accumulation stays
    f32). Use jnp.bfloat16 in production on v6e/v7x for ~2x matmul throughput; kept
    f32 here to preserve tight tolerances against the f32 reference.
    """
    B, L, P = x.shape
    H = num_heads
    assert P % H == 0
    Dh = P // H
    scale = qk_scale if qk_scale is not None else Dh ** -0.5

    # Fold the softmax scale into the q columns of the qkv projection so the attention
    # kernel never multiplies q by scale per kv step. (One-time constant fold; in
    # production do this once at param-init instead of per forward call.)
    w_qkv = jnp.concatenate([params["w_qkv"][:, :P] * scale, params["w_qkv"][:, P:]], axis=1)
    b_qkv = jnp.concatenate([params["b_qkv"][:P] * scale, params["b_qkv"][P:]], axis=0)

    # qkv projection (tiled Pallas GEMM) -> natural packed layout, no transposes anywhere.
    qkv = pallas_linear(x.reshape(B * L, P), w_qkv, b_qkv, mxu_dtype=mxu_dtype)   # (B*L, 3P)
    qkv = qkv.reshape(B, L, 3 * P)                                                # free reshape

    # Flash-style attention; output comes back lane-dense as (B, L, H*Dh).
    o = pallas_attention_core(qkv, H, mxu_dtype=mxu_dtype)                        # (B, L, P)

    # output projection (tiled Pallas GEMM)
    out = pallas_linear(o.reshape(B * L, P), params["w_proj"], params["b_proj"],
                        mxu_dtype=mxu_dtype)
    return out.reshape(B, L, P)


# ------------------------------ reference (JAX) ------------------------------ #

def attention_reference(x, params, num_heads):
    B, L, P = x.shape
    Dh = P // num_heads
    scale = Dh ** -0.5
    qkv = x.reshape(B * L, P) @ params["w_qkv"] + params["b_qkv"]
    qkv = qkv.reshape(B, L, 3, num_heads, Dh).transpose(2, 0, 3, 1, 4)
    q, k, v = qkv[0], qkv[1], qkv[2]
    attn = jnp.einsum("bhqd,bhkd->bhqk", q, k) * scale
    attn = jax.nn.softmax(attn, axis=-1)
    o = jnp.einsum("bhqk,bhkd->bhqd", attn, v)
    o = o.transpose(0, 2, 1, 3).reshape(B * L, P)
    out = o @ params["w_proj"] + params["b_proj"]
    return out.reshape(B, L, P)


# ----------------------------------- main ------------------------------------ #

if __name__ == "__main__":
    # Small but TPU-layout-friendly shapes: P = 128 keeps every block lane-aligned.
    B, L, dim, num_heads = 2, 16, 128, 4

    key = jax.random.PRNGKey(0)
    kx, kp = jax.random.split(key)
    x = jax.random.normal(kx, (B, L, dim), jnp.float32)
    params = init_attention_params(kp, dim, num_heads, qkv_bias=False)

    out = attention_forward(x, params, num_heads)
    out = jax.block_until_ready(out)

    ref = attention_reference(x, params, num_heads)
    assert out.shape == (B, L, dim)
    max_err = float(jnp.max(jnp.abs(out - ref)))
    assert jnp.allclose(out, ref, atol=2e-3, rtol=2e-3), \
        f"mismatch vs reference (max abs err {max_err})"

    print("KERNEL_OK")
</pallas_src>

<mosaic_0001>
module attributes {stable_mosaic.version = 11 : i64} {
  func.func @_linear_kernel(%arg0: i32, %arg1: i32, %arg2: i32, %arg3: memref<32x128xf32, #tpu.memory_space<vmem>>, %arg4: memref<128x128xf32, #tpu.memory_space<vmem>>, %arg5: memref<1x128xf32, #tpu.memory_space<vmem>>, %arg6: memref<32x128xf32, #tpu.memory_space<vmem>>, %arg7: memref<32x128xf32, #tpu.memory_space<vmem>>) attributes {dimension_semantics = [#tpu.dimension_semantics<parallel>, #tpu.dimension_semantics<parallel>, #tpu.dimension_semantics<arbitrary>], iteration_bounds = array<i64: 1, 3, 1>, scalar_prefetch = 0 : i64, scratch_operands = 1 : i64, tpu.core_type = #tpu.core_type<tc>, window_params = [{transform_indices = @transform_0, window_bounds = array<i64: 32, 128>}, {transform_indices = @transform_1, window_bounds = array<i64: 128, 128>}, {transform_indices = @transform_2, window_bounds = array<i64: 1, 128>}, {transform_indices = @transform_3, window_bounds = array<i64: 32, 128>}]} {
    %c0_i32 = arith.constant 0 : i32
    %0 = arith.cmpi eq, %arg2, %c0_i32 : i32
    %1 = arith.extui %0 : i1 to i32
    %c0_i32_0 = arith.constant 0 : i32
    %2 = arith.cmpi ne, %1, %c0_i32_0 : i32
    scf.if %2 {
      %cst_10 = arith.constant 0.000000e+00 : f32
      %12 = vector.broadcast %cst_10 : f32 to vector<32x128xf32>
      %c0_11 = arith.constant 0 : index
      %c0_12 = arith.constant 0 : index
      %13 = vector.load %arg7[%c0_11, %c0_12] : memref<32x128xf32, #tpu.memory_space<vmem>>, vector<32x128xf32>
      tpu.vector_store %arg7[%c0_11, %c0_12], %12 {strides = array<i32>} : memref<32x128xf32, #tpu.memory_space<vmem>>, vector<32x128xf32>,
    } else {
    }
    %c0 = arith.constant 0 : index
    %c0_1 = arith.constant 0 : index
    %3 = vector.load %arg7[%c0, %c0_1] : memref<32x128xf32, #tpu.memory_space<vmem>>, vector<32x128xf32>
    %c0_2 = arith.constant 0 : index
    %c0_3 = arith.constant 0 : index
    %4 = vector.load %arg3[%c0_2, %c0_3] : memref<32x128xf32, #tpu.memory_space<vmem>>, vector<32x128xf32>
    %c0_4 = arith.constant 0 : index
    %c0_5 = arith.constant 0 : index
    %5 = vector.load %arg4[%c0_4, %c0_5] : memref<128x128xf32, #tpu.memory_space<vmem>>, vector<128x128xf32>
    %cst = arith.constant dense<0.000000e+00> : vector<32x128xf32>
    %6 = tpu.matmul %4, %5, %cst {dimension_numbers = #tpu.dot_dimension_numbers<[1], [0], [0], [1], [0, 0, 1, 1], [], []>, precision = #tpu.contract_precision<fp32>} : vector<32x128xf32>, vector<128x128xf32>, vector<32x128xf32> -> vector<32x128xf32>
    %7 = arith.addf %3, %6 : vector<32x128xf32>
    %c0_6 = arith.constant 0 : index
    %c0_7 = arith.constant 0 : index
    %8 = vector.load %arg7[%c0_6, %c0_7] : memref<32x128xf32, #tpu.memory_space<vmem>>, vector<32x128xf32>
    tpu.vector_store %arg7[%c0_6, %c0_7], %7 {strides = array<i32>} : memref<32x128xf32, #tpu.memory_space<vmem>>, vector<32x128xf32>,
    %c0_i32_8 = arith.constant 0 : i32
    %9 = arith.cmpi eq, %arg2, %c0_i32_8 : i32
    %10 = arith.extui %9 : i1 to i32
    %c0_i32_9 = arith.constant 0 : i32
    %11 = arith.cmpi ne, %10, %c0_i32_9 : i32
    scf.if %11 {
      %c0_10 = arith.constant 0 : index
      %c0_11 = arith.constant 0 : index
      %12 = vector.load %arg7[%c0_10, %c0_11] : memref<32x128xf32, #tpu.memory_space<vmem>>, vector<32x128xf32>
      %c0_12 = arith.constant 0 : index
      %c0_13 = arith.constant 0 : index
      %13 = vector.load %arg5[%c0_12, %c0_13] : memref<1x128xf32, #tpu.memory_space<vmem>>, vector<1x128xf32>
      %14 = vector.broadcast %13 : vector<1x128xf32> to vector<32x128xf32>
      %15 = arith.addf %12, %14 : vector<32x128xf32>
      %c0_14 = arith.constant 0 : index
      %c0_15 = arith.constant 0 : index
      %16 = vector.load %arg6[%c0_14, %c0_15] : memref<32x128xf32, #tpu.memory_space<vmem>>, vector<32x128xf32>
      tpu.vector_store %arg6[%c0_14, %c0_15], %15 {strides = array<i32>} : memref<32x128xf32, #tpu.memory_space<vmem>>, vector<32x128xf32>,
    } else {
    }
    return
  }
  func.func @transform_0(%arg0: i32, %arg1: i32, %arg2: i32) -> (i32, i32) {
    %c0_i32 = arith.constant 0 : i32
    return %arg0, %arg2 : i32, i32
  }
  func.func @transform_1(%arg0: i32, %arg1: i32, %arg2: i32) -> (i32, i32) {
    %c0_i32 = arith.constant 0 : i32
    return %arg2, %arg1 : i32, i32
  }
  func.func @transform_2(%arg0: i32, %arg1: i32, %arg2: i32) -> (i32, i32) {
    %c0_i32 = arith.constant 0 : i32
    %c0_i32_0 = arith.constant 0 : i32
    return %c0_i32, %arg1 : i32, i32
  }
  func.func @transform_3(%arg0: i32, %arg1: i32, %arg2: i32) -> (i32, i32) {
    %c0_i32 = arith.constant 0 : i32
    return %arg0, %arg1 : i32, i32
  }
}

</mosaic_0001>

<bundles_post_ra>
// kernel: tpu_custom_call.1
= control target key start
LH: loop header
LB: loop body
LE: loop exit
PB: predicated region body
PF: predicated region fallthrough
CT: control target
= control target key end

     0   :  { %8 = vsyncpa [#allocation4], 0  ;;  %s2572_s0 = inlined_call_operand.hbm [shape: f32[32,128], index: 0, kind: input, shape index: {}]   ;;  %s2573_s1 = inlined_call_operand.hbm [shape: f32[128,384], index: 1, kind: input, shape index: {}]   ;;  %s2574_s2 = inlined_call_operand.vmem [shape: f32[1,384], index: 2, kind: input, shape index: {}]   ;;  %s2575_s3 = inlined_call_operand.hbm [shape: f32[32,384], index: 3, kind: output, shape index: {}]  }
   0x1   :  { %9 = vsyncpa [#allocation7], 0 }
   0x2   :  { %11 = vsyncpa [#allocation7 + $0x1], 0 }
   0x3   :  { %12 = vsyncpa [#allocation5], 0 }
   0x4   :  { %14 = vsyncpa [#allocation5 + $0x1], 0  ;;  %s2048_s12 = smov 0   ;;  %s2050_s13 = smov 0  }
   0x5   :  { %s2052_s14 = smov 0   ;;  %s2054_s15 = smov 0  }
   0x6   :  { %s2056_s16 = smov 0   ;;  %s2058_s17 = smov 0  }
   0x7 LB: > { %s1218_s18 = sadd.s32 4294967295, %s2017_s17   ;;  %s1219_s19 = sadd.s32 4294967294, %s2017_s17   ;;  %s2017_s17 = sphi %s2058_s17, %s20_s17   ;;  %s2013_s16 = sphi %s2056_s16, %s2606_s16   ;;  %s2009_s15 = sphi %s2054_s15, %s2605_s15   ;;  %s2005_s14 = sphi %s2052_s14, %s2604_s14   ;;  %s2001_s13 = sphi %s2050_s13, %s2603_s13   ;;  %s1997_s12 = sphi %s2048_s12, %s2602_s12  }
   0x8   : > { %p83_p0 = scmp.ne.s32.totalorder %s2005_s14, %s2001_s13  ;;  %p84_p1 = scmp.eq.s32.totalorder %s2017_s17, 0 }
   0x9   : > { %p89_p2 = scmp.ne.s32.totalorder %s2001_s13, %s1997_s12  ;;  %p2085_p3 = scmp.eq.s32.totalorder %s1218_s18, 0 }
   0xa   : > { %p2089_p4 = por %p84_p1, %p83_p0  ;;  %p141_p5 = scmp.eq.s32.totalorder %s1218_s18, 2 }
   0xb   : > { %s2585_s20 = scalar_select %p2085_p3, 1, 0 }
   0xc   : > { %p2095_p6 = por %p2085_p3, %p89_p2  ;;  %p147_p7 = scmp.eq.s32.totalorder %s1219_s19, 2 }
   0xd   : > { %p2099_p8 = por %p141_p5, %p83_p0  ;;  %p1220_p9 = scmp.ge.s32.totalorder %s2017_s17, 1 }
   0xe   : > { %s2587_s22 = scalar_select %p2095_p6, 1, 0 }
   0xf   : > { %s2588_s23 = scalar_select %p2099_p8, 1, 0 }
  0x10   : > { %p2104_p10 = por %p147_p7, %p89_p2  ;;  %p154_p11 = scmp.lt.s32.totalorder %s2017_s17, 4 }
  0x11   : > { %s2019_s26 = smov [#allocation3]   ;;  %p1815_p0 = scmp.lt.s32.totalorder %s2017_s17, 3 }
  0x12   : > { %s2589_s24 = scalar_select %p2104_p10, 1, 0 }
  0x13   : > { %p2109_p12 = pnand %p1220_p9, %p154_p11  ;;  %s170_s27 = sshll.u32 %s2019_s26, 4  ;;  %s171_s27 = int_to_ptr.vmem [resolvable:$true] %s170_s27 }
  0x14   : > { %p2124_p2 = pnand %p1815_p0, %p2089_p4  ;;  %s35_s30 = sadd.s32 1, %s2013_s16 }
  0x15   : > { %s2590_s25 = scalar_select %p2109_p12, 1, 0 }
  0x16   : > { %p1802_p13 = pneg %p2109_p12  ;;  %s1873_s6 = scalar_lea.hbm %s2572_s0, 512 }
  0x17   : > { %s2592_s29 = scalar_select %p2124_p2, 1, 0 }
  0x18   : > { %p2118_p1 = pnand %p1802_p13, %p2085_p3  ;;  %p1874_p5 = scmp.ne.s32.totalorder %s2572_s0, %s1873_s6 }
  0x19   : > { %p1880_p4 = scmp.lt.u32.totalorder %s1873_s6, %s2572_s0 }
  0x1a   : > { %p1875_p7 = pneg %p2118_p1 }
  0x1c   : > { %p1876_p9 = pnand %p1875_p7, %p1874_p5 }
  0x1e   : > { %p1877_p11 = pneg %p1876_p9 }
  0x20   : > { %p1882_p13 = pnand %p1880_p4, %p1877_p11 }
  0x22   : > { %1885 = shalt.err (!%p1882_p13)
}
  0x23   : > { %s1886_s11 = scalar_lea.vmem %s171_s27, 512  ;;  %p1894_p6 = scmp.lt.s32.totalorder %s171_s27, %s171_s27 }
  0x24   : > { %p1887_p0 = scmp.ne.s32.totalorder %s171_s27, %s1886_s11  ;;  %p1895_p3 = scmp.lt.s32.totalorder %s1886_s11, %s1886_s11 }
  0x26   : > { %p1889_p10 = pnand %p1887_p0, %p1875_p7  ;;  %p1896_p12 = por %p1895_p3, %p1894_p6 }
  0x28   : > { %p1890_p8 = pneg %p1889_p10 }
  0x2a   : > { %p1897_p2 = pnand %p1896_p12, %p1890_p8 }
  0x2c   : > { %1900 = shalt.err (!%p1897_p2)
}
  0x2d   : > { %s2582_s18 = smov 128   ;;  %s2021_s19 = smov 8  }
  0x2e   : > { %1805 = dma.hbm_to_vmem [thread:$0]  (!%p2118_p1), %s2572_s0, 512, %s171_s27, [#allocation4], %s2582_s18, %s2582_s18, %s2021_s19  }
  0x2f   : > { %p37_p10 = scmp.ge.s32.totalorder %s35_s30, 3  ;;  %s76_s4 = sadd.s32 1, %s2005_s14 }
  0x30   : > { %s184_s5 = sand.u32 1, %s2005_s14   ;;  %s1224_s8 = sshll.u32 %s2013_s16, 7 }
  0x31   : > { %s2608_s30 = smov (%p37_p10, %s35_s30), 0  ;;  %s1223_s6 = sshll.u32 %s184_s5, 7 }
  0x32   : > { %s72_s7 = ssub.s32 %s2013_s16, %s2608_s30  ;;  %s2158_s10 = scalar_lea.hbm %s2573_s1, %s1224_s8 }
  0x33   : > { %p74_p3 = scmp.eq.s32.totalorder %s72_s7, 0  ;;  %s188_s27 = scalar_lea.vmem [#allocation6], %s1223_s6 }
  0x34   : > { %s197_s11 = sshll.u32 %s188_s27, 4  ;;  %s2165_s26 = scalar_lea.sflag [#allocation7], %s184_s5  ;;  %s2163_s11 = int_to_ptr.vmem [resolvable:$true] %s197_s11 }
  0x35   : > { %s2161_s21 = scalar_select %p74_p3, %s2005_s14, %s76_s4  }
  0x36   : > { %s1901_s18 = scalar_lea.hbm %s2158_s10, 2048  ;;  %p2593_p8 = scmp.ne.s32.totalorder %s2592_s29, 0 }
  0x37   : > { %p1902_p6 = scmp.ne.s32.totalorder %s2158_s10, %s1901_s18  ;;  %s1906_s28 = scalar_lea.hbm %s2573_s1, 6144 }
  0x38   : > { %p1903_p12 = pneg %p2593_p8  ;;  %p1907_p5 = scmp.lt.u32.totalorder %s2158_s10, %s2573_s1 }
  0x39   : > { %p1908_p7 = scmp.lt.u32.totalorder %s1906_s28, %s1901_s18  ;;  %p1910_p11 = scmp.lt.u32.totalorder %s1901_s18, %s2158_s10 }
  0x3a   : > { %p1904_p1 = pnand %p1903_p12, %p1902_p6 }
  0x3b   : > { %p1909_p9 = por %p1908_p7, %p1907_p5 }
  0x3c   : > { %p1905_p2 = pneg %p1904_p1 }
  0x3d   : > { %p1911_p4 = por %p1910_p11, %p1909_p9 }
  0x3f   : > { %p1912_p13 = pnand %p1911_p4, %p1905_p2 }
  0x41   : > { %1915 = shalt.err (!%p1912_p13)
}
  0x42   : > { %s1916_s4 = scalar_lea.vmem %s2163_s11, 2048  ;;  %s2022_s5 = smov [#allocation6]  }
  0x43   : > { %p1917_p0 = scmp.ne.s32.totalorder %s2163_s11, %s1916_s4  ;;  %s1921_s27 = sshll.u32 %s2022_s5, 4  ;;  %s1922_s27 = int_to_ptr.vmem [resolvable:$false] %s1921_s27 }
  0x44   : > { %s1923_s7 = scalar_lea.vmem %s1922_s27, 4096  ;;  %p1924_p6 = scmp.lt.s32.totalorder %s2163_s11, %s1922_s27 }
  0x45   : > { %p1919_p10 = pnand %p1917_p0, %p1903_p12  ;;  %p1925_p1 = scmp.lt.s32.totalorder %s1923_s7, %s1916_s4 }
  0x47   : > { %p1920_p3 = pneg %p1919_p10  ;;  %p1926_p5 = por %p1925_p1, %p1924_p6 }
  0x49   : > { %p1927_p7 = pnand %p1926_p5, %p1920_p3 }
  0x4b   : > { %1930 = shalt.err (!%p1927_p7)
}
  0x4c   : > { %s2023_s18 = smov 384   ;;  %s2594_s8 = smov 128  }
  0x4d   : > { %1809 = dma.hbm_to_vmem [thread:$0]  (!%p2593_p8), %s2158_s10, 2048, %s2163_s11, %s2165_s26, %s2023_s18, %s2594_s8, %s2021_s19  }
  0x4e   : > { %p2595_p12 = scmp.ne.s32.totalorder %s2590_s25, 0 }
  0x4f   : > { %p2596_p2 = scmp.ne.s32.totalorder (!%p2595_p12), %s2585_s20, 0 }
  0x50   : > { %215 = sbr.rel (%p2595_p12) target bundleno = 430 (0x1ae), region = 32 }
  0x57   : > { %1984 = dma.done.wait (%p2596_p2), [#allocation4], 512  }
  0x58   : > { %1986 = vsyncadd (%p2596_p2), [#allocation4], 4294966784  ;;  %s2202_s28 = sand.u32 1, %s2001_s13   ;;  %p2597_p8 = scmp.ne.s32.totalorder %s2587_s22, 0 }
  0x59   : > { %s1227_s29 = sshll.u32 %s2202_s28, 7  ;;  %s222_s6 = scalar_lea.sflag [#allocation7], %s2202_s28 }
  0x5a   : > { %s2206_s9 = scalar_lea.vmem [#allocation6], %s1227_s29 }
  0x5b   : > { %1988 = dma.done.wait (%p2597_p8), %s222_s6, 2048  }
  0x5c   : > { %1990 = vsyncadd (%p2597_p8), %s222_s6, 4294965248  ;;  %v273_v0 = vld [vmem:[%s2206_s9] sm:$0xff]  ;;  %v274_v1 = vld [vmem:[%s2206_s9 + $0x8] sm:$0xff]  ;;  %p253_p9 = scmp.lt.s32.totalorder %s2009_s15, 2  ;;  %s1228_s10 = sshll.u32 %s2202_s28, 5 }
  0x5d   : > { %v275_v2 = vld [vmem:[%s2206_s9 + $0x10] sm:$0xff]  ;;  %v290_v3 = vand.u32 4294901760, %v273_v0  ;;  %v293_v4 = vand.u32 4294901760, %v274_v1  ;;  %v276_v5 = vld [vmem:[%s2206_s9 + $0x18] sm:$0xff]  ;;  %v2217_v7 = vld [vmem:[%s2206_s9 + $0x20] sm:$0xff]  ;;  %s250_s11 = scalar_lea.vmem [#allocation8], %s1228_s10 }
  0x5e   : > { %v296_v6 = vand.u32 4294901760, %v275_v2  ;;  %v2220_v8 = vld [vmem:[%s2206_s9 + $0x28] sm:$0xff]  ;;  %v299_v9 = vand.u32 4294901760, %v276_v5  ;;  %v302_v11 = vand.u32 4294901760, %v2217_v7  ;;  %v2229_v14 = vld [vmem:[%s2206_s9 + $0x30] sm:$0xff]  ;;  %v2232_v15 = vld [vmem:[%s2206_s9 + $0x38] sm:$0xff] }
  0x5f   : > { %v2222_v10 = vpack.c.bf16 %v293_v4, %v290_v3  ;;  %v305_v12 = vand.u32 4294901760, %v2220_v8  ;;  %v269_v16 = vld [vmem:[#allocation3] sm:$0xff]  ;;  %v308_v19 = vand.u32 4294901760, %v2229_v14  ;;  %v311_v20 = vand.u32 4294901760, %v2232_v15  ;;  %v2254_v22 = vld [vmem:[%s2206_s9 + $0x48] sm:$0xff]  ;;  %v2273_v28 = vld [vmem:[%s2206_s9 + $0x50] sm:$0xff] }
  0x60   : > { %v2226_v13 = vpack.c.bf16 %v299_v9, %v296_v6  ;;  %v2238_v17 = vand.u32 4294901760, %v269_v16  ;;  %v2251_v21 = vld [vmem:[%s2206_s9 + $0x40] sm:$0xff]  ;;  %v317_v27 = vand.u32 4294901760, %v2254_v22  ;;  %v2276_v29 = vld [vmem:[%s2206_s9 + $0x58] sm:$0xff]  ;;  %v320_v31 = vand.u32 4294901760, %v2273_v28  ;;  %v270_v33 = vld [vmem:[#allocation3 + $0x8] sm:$0xff] }
  0x61   : > { %1583 = vmatprep.subr.bf16.mxu1 %v2222_v10  ;;  %1679 = vmatprep.subr.bf16.mxu0 %v2222_v10  ;;  %v2246_v18 = vpack.c.bf16 %v305_v12, %v302_v11  ;;  %v2268_v25 = vpack.c.bf16 %v311_v20, %v308_v19  ;;  %v314_v26 = vand.u32 4294901760, %v2251_v21  ;;  %v323_v35 = vand.u32 4294901760, %v2276_v29  ;;  %v2292_v36 = vld [vmem:[%s2206_s9 + $0x60] sm:$0xff]  ;;  %v2295_v37 = vld [vmem:[%s2206_s9 + $0x68] sm:$0xff]  ;;  %v2302_v40 = vld [vmem:[%s2206_s9 + $0x70] sm:$0xff]  ;;  %s254_s20 = scalar_select %p253_p9, %s2009_s15, 2 }
  0x62   : > { %1585 = vmatpush3.bf16.msra.mxu1 %v2222_v10  ;;  %1681 = vmatpush3.bf16.msra.mxu0 %v2222_v10  ;;  %v2257_v23 = vsub.f32 %v269_v16, %v2238_v17  ;;  %v2297_v38 = vsub.f32 %v273_v0, %v290_v3  ;;  %v2299_v39 = vsub.f32 %v274_v1, %v293_v4  ;;  %v2304_v41 = vand.u32 4294901760, %v270_v33  ;;  %v2315_v46 = vld [vmem:[%s2206_s9 + $0x78] sm:$0xff]  ;;  %v271_v55 = vld [vmem:[#allocation3 + $0x10] sm:$0xff]  ;;  %s1105_s26 = sshll.u32 %s250_s11, 4  ;;  %s1231_s4 = sshll.u32 %s2009_s15, 7  ;;  %s2519_s26 = int_to_ptr.vmem [resolvable:$true] %s1105_s26 }
  0x63   : > { %1587 = vmatprep.subr.bf16.mxu1 %v2226_v13  ;;  %1683 = vmatprep.subr.bf16.mxu0 %v2226_v13  ;;  %v2288_v34 = vpack.c.bf16 %v317_v27, %v314_v26  ;;  %v2306_v42 = vsub.f32 %v275_v2, %v296_v6  ;;  %v2308_v43 = vsub.f32 %v276_v5, %v299_v9  ;;  %v326_v44 = vand.u32 4294901760, %v2292_v36  ;;  %v272_v62 = vld [vmem:[#allocation3 + $0x18] sm:$0xff]  ;;  %s255_s19 = scalar_lea.vmem %s2574_s2, %s254_s20  ;;  %s2524_s7 = scalar_lea.hbm %s2575_s3, %s1231_s4 }
  0x64   : > { %v372_v24 = vand.u32 4294901760, %v2257_v23  ;;  %v329_v45 = vand.u32 4294901760, %v2295_v37  ;;  %v2323_v47 = vpack.c.bf16 %v323_v35, %v320_v31  ;;  %v413_v48 = vand.u32 4294901760, %v2297_v38  ;;  %s1090_s15 = scalar_lea.sflag [#allocation5], %s2202_s28  ;;  %s1931_s18 = scalar_lea.vmem %s2519_s26, 512 }
  0x65   : > { %v420_v49 = vand.u32 4294901760, %v2299_v39  ;;  %v2584_v50 = vand.u32 4294901760, %v2302_v40  ;;  %v2583_v51 = vand.u32 4294901760, %v2315_v46  ;;  %v2330_v52 = vsub.f32 %v270_v33, %v2304_v41  ;;  %p1932_p11 = scmp.ne.s32.totalorder %s2519_s26, %s1931_s18  ;;  %p2600_p4 = scmp.ne.s32.totalorder %s2588_s23, 0 }
  0x66   : > { %1589 = vmatpush3.bf16.msra.mxu1 %v2226_v13  ;;  %1685 = vmatpush3.bf16.msra.mxu0 %v2226_v13  ;;  %v373_v30 = vsub.f32 %v2257_v23, %v372_v24  ;;  %v427_v53 = vand.u32 4294901760, %v2306_v42  ;;  %v434_v54 = vand.u32 4294901760, %v2308_v43  ;;  %v2340_v56 = vpack.c.bf16 %v329_v45, %v326_v44  ;;  %s2024_s8 = smov [#allocation8]  }
  0x67   : > { %1591 = vmatprep.subr.bf16.mxu1 %v2246_v18  ;;  %1687 = vmatprep.subr.bf16.mxu0 %v2246_v18  ;;  %v2345_v57 = vsub.f32 %v2217_v7, %v302_v11  ;;  %v414_v58 = vsub.f32 %v2297_v38, %v413_v48  ;;  %v421_v59 = vsub.f32 %v2299_v39, %v420_v49  ;;  %v2356_v61 = vand.u32 4294901760, %v271_v55  ;;  %p1933_p13 = pnand %p1932_p11, %p2600_p4  ;;  %s1935_s29 = sshll.u32 %s2024_s8, 4  ;;  %s1936_s29 = int_to_ptr.vmem [resolvable:$false] %s1935_s29 }
  0x68   : > { %1500 = vmatprep.mubr.f32.mxu0 %v372_v24  ;;  %v374_v32 = vand.u32 4294901760, %v373_v30  ;;  %v2354_v60 = vsub.f32 %v2220_v8, %v305_v12  ;;  %v2362_v63 = vpack.c.bf16 %v2583_v51, %v2584_v50  ;;  %v382_v0 = vand.u32 4294901760, %v2330_v52  ;;  %s1937_s6 = scalar_lea.vmem %s1936_s29, 1024  ;;  %p1938_p10 = scmp.lt.s32.totalorder %s2519_s26, %s1936_s29 }
  0x69   : > { %v428_v1 = vsub.f32 %v2306_v42, %v427_v53  ;;  %v435_v2 = vsub.f32 %v2308_v43, %v434_v54  ;;  %v441_v3 = vand.u32 4294901760, %v2345_v57  ;;  %v2373_v4 = vsub.f32 %v2229_v14, %v308_v19  ;;  %p1934_p0 = pneg %p1933_p13  ;;  %p1939_p3 = scmp.lt.s32.totalorder %s1937_s6, %s1931_s18 }
  0x6a   : > { %1593 = vmatpush3.bf16.msra.mxu1 %v2246_v18  ;;  %1689 = vmatpush3.bf16.msra.mxu0 %v2246_v18  ;;  %v2378_v5 = vsub.f32 %v2232_v15, %v311_v20  ;;  %v2381_v6 = vsub.f32 %v271_v55, %v2356_v61  ;;  %v415_v7 = vand.u32 4294901760, %v414_v58  ;;  %v422_v8 = vand.u32 4294901760, %v421_v59 }
  0x6b   : > { %1595 = vmatprep.subr.bf16.mxu1 %v2268_v25  ;;  %1691 = vmatprep.subr.bf16.mxu0 %v2268_v25  ;;  %v448_v9 = vand.u32 4294901760, %v2354_v60  ;;  %v2386_v11 = vand.u32 4294901760, %v272_v62  ;;  %v1710_v12 = vpack.c.bf16 %v420_v49, %v413_v48  ;;  %v383_v16 = vsub.f32 %v2330_v52, %v382_v0  ;;  %p1940_p6 = por %p1939_p3, %p1938_p10 }
  0x6c   : > { %1386 = vmatprep.mubr.f32.mxu1 %v374_v32  ;;  %v392_v14 = vand.u32 4294901760, %v2381_v6  ;;  %v429_v15 = vand.u32 4294901760, %v428_v1  ;;  %v2393_v19 = vsub.f32 %v2251_v21, %v314_v26  ;;  %v436_v24 = vand.u32 4294901760, %v435_v2 }
  0x6d   : > { %v2396_v20 = vsub.f32 %v272_v62, %v2386_v11  ;;  %v442_v30 = vsub.f32 %v2345_v57, %v441_v3  ;;  %v455_v32 = vand.u32 4294901760, %v2373_v4  ;;  %v462_v33 = vand.u32 4294901760, %v2378_v5  ;;  %p1941_p1 = pnand %p1940_p6, %p1934_p0 }
  0x6e   : > { %1597 = vmatpush3.bf16.msra.mxu1 %v2268_v25  ;;  %1693 = vmatpush3.bf16.msra.mxu0 %v2268_v25  ;;  %v1614_v21 = vpack.c.bf16 %v422_v8, %v415_v7  ;;  %v449_v26 = vsub.f32 %v2354_v60, %v448_v9  ;;  %v2409_v48 = vsub.f32 %v2254_v22, %v317_v27  ;;  %v384_v59 = vand.u32 4294901760, %v383_v16 }
  0x6f   : > { %1599 = vmatprep.subr.bf16.mxu1 %v2288_v34  ;;  %1695 = vmatprep.subr.bf16.mxu0 %v2288_v34  ;;  %v402_v49 = vand.u32 4294901760, %v2396_v20  ;;  %v1714_v55 = vpack.c.bf16 %v434_v54, %v427_v53  ;;  %v393_v58 = vsub.f32 %v2381_v6, %v392_v14  ;;  %v469_v62 = vand.u32 4294901760, %v2393_v19 }
  0x70   : > { %v2417_v1 = vsub.f32 %v2273_v28, %v320_v31  ;;  %v456_v22 = vsub.f32 %v2373_v4, %v455_v32  ;;  %v463_v27 = vsub.f32 %v2378_v5, %v462_v33  ;;  %v2427_v53 = vsub.f32 %v2276_v29, %v323_v35 }
  0x71   : > { %v403_v2 = vsub.f32 %v2396_v20, %v402_v49  ;;  %v1618_v54 = vpack.c.bf16 %v436_v24, %v429_v15  ;;  %v443_v28 = vand.u32 4294901760, %v442_v30  ;;  %v450_v31 = vand.u32 4294901760, %v449_v26 }
  0x72   : > { %1601 = vmatpush3.bf16.msra.mxu1 %v2288_v34  ;;  %1697 = vmatpush3.bf16.msra.mxu0 %v2288_v34  ;;  %v476_v7 = vand.u32 4294901760, %v2409_v48  ;;  %v394_v8 = vand.u32 4294901760, %v393_v58  ;;  %v1718_v16 = vpack.c.bf16 %v448_v9, %v441_v3  ;;  %v470_v51 = vsub.f32 %v2393_v19, %v469_v62 }
  0x73   : > { %1603 = vmatprep.subr.bf16.mxu1 %v2323_v47  ;;  %1699 = vmatprep.subr.bf16.mxu0 %v2323_v47  ;;  %v2434_v50 = vsub.f32 %v2292_v36, %v326_v44  ;;  %v404_v29 = vand.u32 4294901760, %v403_v2  ;;  %v457_v35 = vand.u32 4294901760, %v456_v22  ;;  %v464_v15 = vand.u32 4294901760, %v463_v27 }
  0x74   : > { %v483_v24 = vand.u32 4294901760, %v2417_v1  ;;  %v490_v30 = vand.u32 4294901760, %v2427_v53  ;;  %v477_v3 = vsub.f32 %v2409_v48, %v476_v7  ;;  %v2442_v9 = vsub.f32 %v2295_v37, %v329_v45 }
  0x75   : > { %v1722_v36 = vpack.c.bf16 %v462_v33, %v455_v32  ;;  %v471_v44 = vand.u32 4294901760, %v470_v51  ;;  %v497_v58 = vand.u32 4294901760, %v2434_v50  ;;  %v2598_v45 = vand.u32 4294901760, %v2302_v40 }
  0x76   : > { %1605 = vmatpush3.bf16.msra.mxu1 %v2323_v47  ;;  %1701 = vmatpush3.bf16.msra.mxu0 %v2323_v47  ;;  %v491_v26 = vsub.f32 %v2427_v53, %v490_v30  ;;  %v504_v37 = vand.u32 4294901760, %v2442_v9  ;;  %v1726_v33 = vpack.c.bf16 %v476_v7, %v469_v62 }
  0x77   : > { %1607 = vmatprep.subr.bf16.mxu1 %v2340_v56  ;;  %1703 = vmatprep.subr.bf16.mxu0 %v2340_v56  ;;  %v2451_v51 = vsub.f32 %v2302_v40, %v2598_v45  ;;  %v498_v2 = vsub.f32 %v2434_v50, %v497_v58 }
  0x78   : > { %v505_v22 = vsub.f32 %v2442_v9, %v504_v37 }
  0x79   : > { %v511_v27 = vand.u32 4294901760, %v2451_v51  ;;  %v499_v62 = vand.u32 4294901760, %v498_v2 }
  0x7a   : > { %1609 = vmatpush3.bf16.msra.mxu1 %v2340_v56  ;;  %1705 = vmatpush3.bf16.msra.mxu0 %v2340_v56 }
  0x7b   : > { %1611 = vmatprep.subr.bf16.mxu1 %v2362_v63  ;;  %1707 = vmatprep.subr.bf16.mxu0 %v2362_v63  ;;  %v512_v7 = vsub.f32 %v2451_v51, %v511_v27 }
  0x7e   : > { %1613 = vmatpush3.bf16.msra.mxu1 %v2362_v63  ;;  %1709 = vmatpush3.bf16.msra.mxu0 %v2362_v63 }
  0x7f   : > { %1615 = vmatprep.subr.bf16.mxu1 %v1614_v21  ;;  %1711 = vmatprep.subr.bf16.mxu0 %v1710_v12 }
  0x81   : > { %1387 = vmatmul.mubr.f32.vlgmr.msra.gmra.mrb[0].mxu1 %v384_v59  ;;  %1501 = vmatmul.mubr.f32.vlgmr.msra.gmra.mrb[0].mxu0 %v382_v0  ;;  %v1622_v0 = vpack.c.bf16 %v450_v31, %v443_v28  ;;  %v478_v59 = vand.u32 4294901760, %v477_v3  ;;  %v1730_v28 = vpack.c.bf16 %v490_v30, %v483_v24  ;;  %v506_v31 = vand.u32 4294901760, %v505_v22 }
  0x82   : > { %1617 = vmatpush3.bf16.msra.mxu1 %v1614_v21  ;;  %1713 = vmatpush3.bf16.msra.mxu0 %v1710_v12  ;;  %v1626_v12 = vpack.c.bf16 %v464_v15, %v457_v35  ;;  %v484_v21 = vsub.f32 %v2417_v1, %v483_v24  ;;  %v513_v35 = vand.u32 4294901760, %v512_v7  ;;  %v1650_v3 = vpack.c.bf16 %v2308_v43, %v2306_v42 }
  0x83   : > { %1619 = vmatprep.subr.bf16.mxu1 %v1618_v54  ;;  %1715 = vmatprep.subr.bf16.mxu0 %v1714_v55  ;;  %v1630_v40 = vpack.c.bf16 %v478_v59, %v471_v44 }
  0x84   : > { %1389 = vmatprep.mubr.f32.mxu1 %v394_v8  ;;  %1503 = vmatprep.mubr.f32.mxu0 %v392_v14  ;;  %v2599_v14 = vand.u32 4294901760, %v2315_v46 }
  0x85   : > { %1390 = vmatmul.mubr.f32.gmra.mrb[2].mxu1 %v404_v29  ;;  %1504 = vmatmul.mubr.f32.gmra.mrb[2].mxu0 %v402_v49  ;;  %v485_v49 = vand.u32 4294901760, %v484_v21  ;;  %v1734_v29 = vpack.c.bf16 %v504_v37, %v497_v58 }
  0x86   : > { %1621 = vmatpush3.bf16.msra.mxu1 %v1618_v54  ;;  %1717 = vmatpush3.bf16.msra.mxu0 %v1714_v55  ;;  %v2456_v32 = vsub.f32 %v2315_v46, %v2599_v14  ;;  %v492_v55 = vand.u32 4294901760, %v491_v26 }
  0x87   : > { %1623 = vmatprep.subr.bf16.mxu1 %v1622_v0  ;;  %1719 = vmatprep.subr.bf16.mxu0 %v1718_v16 }
  0x88   : > { %1424 = vmatprep.mubr.f32.mxu1 %v2238_v17  ;;  %1538 = vmatprep.mubr.f32.mxu0 %v2238_v17  ;;  %v518_v46 = vand.u32 4294901760, %v2456_v32  ;;  %v1634_v54 = vpack.c.bf16 %v492_v55, %v485_v49 }
  0x8a   : > { %1625 = vmatpush3.bf16.msra.mxu1 %v1622_v0  ;;  %1721 = vmatpush3.bf16.msra.mxu0 %v1718_v16  ;;  %v519_v8 = vsub.f32 %v2456_v32, %v518_v46  ;;  %v1638_v16 = vpack.c.bf16 %v506_v31, %v499_v62  ;;  %v1738_v30 = vpack.c.bf16 %v518_v46, %v511_v27 }
  0x8b   : > { %1627 = vmatprep.subr.bf16.mxu1 %v1626_v12  ;;  %1723 = vmatprep.subr.bf16.mxu0 %v1722_v36  ;;  %v1646_v0 = vpack.c.bf16 %v2299_v39, %v2297_v38  ;;  %v1654_v38 = vpack.c.bf16 %v2354_v60, %v2345_v57  ;;  %v1662_v39 = vpack.c.bf16 %v2409_v48, %v2393_v19 }
  0x8c   : > { %v520_v15 = vand.u32 4294901760, %v519_v8 }
  0x8e   : > { %1629 = vmatpush3.bf16.msra.mxu1 %v1626_v12  ;;  %1725 = vmatpush3.bf16.msra.mxu0 %v1722_v36  ;;  %v1642_v24 = vpack.c.bf16 %v520_v15, %v513_v35 }
  0x8f   : > { %1631 = vmatprep.subr.bf16.mxu1 %v1630_v40  ;;  %1727 = vmatprep.subr.bf16.mxu0 %v1726_v33 }
  0x92   : > { %1633 = vmatpush3.bf16.msra.mxu1 %v1630_v40  ;;  %1729 = vmatpush3.bf16.msra.mxu0 %v1726_v33 }
  0x93   : > { %1635 = vmatprep.subr.bf16.mxu1 %v1634_v54  ;;  %1731 = vmatprep.subr.bf16.mxu0 %v1730_v28 }
  0x96   : > { %1637 = vmatpush3.bf16.msra.mxu1 %v1634_v54  ;;  %1733 = vmatpush3.bf16.msra.mxu0 %v1730_v28 }
  0x97   : > { %1639 = vmatprep.subr.bf16.mxu1 %v1638_v16  ;;  %1735 = vmatprep.subr.bf16.mxu0 %v1734_v29 }
  0x9a   : > { %1641 = vmatpush3.bf16.msra.mxu1 %v1638_v16  ;;  %1737 = vmatpush3.bf16.msra.mxu0 %v1734_v29 }
  0x9b   : > { %1643 = vmatprep.subr.bf16.mxu1 %v1642_v24  ;;  %1739 = vmatprep.subr.bf16.mxu0 %v1738_v30 }
  0x9e   : > { %1645 = vmatpush3.bf16.msra.mxu1 %v1642_v24  ;;  %1741 = vmatpush3.bf16.msra.mxu0 %v1738_v30 }
  0x9f   : > { %1647 = vmatprep.subr.bf16.mxu1 %v1646_v0  ;;  %1743 = vmatprep.subr.bf16.mxu0 %v2222_v10 }
  0xa1   : > { %1425 = vmatmul.mubr.f32.vlgmr.msra.gmra.mrb[0].mxu1 %v2304_v41  ;;  %1539 = vmatmul.mubr.f32.vlgmr.msra.gmra.mrb[0].mxu0 %v2304_v41 }
  0xa2   : > { %1649 = vmatpush3.bf16.msra.mxu1 %v1646_v0  ;;  %1745 = vmatpush3.bf16.msra.mxu0 %v2222_v10  ;;  %v1658_v10 = vpack.c.bf16 %v2378_v5, %v2373_v4 }
  0xa3   : > { %1651 = vmatprep.subr.bf16.mxu1 %v1650_v3  ;;  %1747 = vmatprep.subr.bf16.mxu0 %v2226_v13 }
  0xa4   : > { %1427 = vmatprep.mubr.f32.mxu1 %v2356_v61  ;;  %1541 = vmatprep.mubr.f32.mxu0 %v2356_v61 }
  0xa5   : > { %1428 = vmatmul.mubr.f32.gmra.mrb[2].mxu1 %v2386_v11  ;;  %1542 = vmatmul.mubr.f32.gmra.mrb[2].mxu0 %v2386_v11 }
  0xa6   : > { %1653 = vmatpush3.bf16.msra.mxu1 %v1650_v3  ;;  %1749 = vmatpush3.bf16.msra.mxu0 %v2226_v13  ;;  %v1666_v13 = vpack.c.bf16 %v2427_v53, %v2417_v1 }
  0xa7   : > { %1655 = vmatprep.subr.bf16.mxu1 %v1654_v38  ;;  %1751 = vmatprep.subr.bf16.mxu0 %v2246_v18 }
  0xa8   : > { %1462 = vmatprep.mubr.f32.mxu1 %v2257_v23  ;;  %1576 = vmatprep.mubr.f32.mxu0 %v2238_v17  ;;  %v1670_v17 = vpack.c.bf16 %v2442_v9, %v2434_v50 }
  0xaa   : > { %1657 = vmatpush3.bf16.msra.mxu1 %v1654_v38  ;;  %1753 = vmatpush3.bf16.msra.mxu0 %v2246_v18  ;;  %v1674_v18 = vpack.c.bf16 %v2456_v32, %v2451_v51 }
  0xab   : > { %1659 = vmatprep.subr.bf16.mxu1 %v1658_v10  ;;  %1755 = vmatprep.subr.bf16.mxu0 %v2268_v25 }
  0xae   : > { %1661 = vmatpush3.bf16.msra.mxu1 %v1658_v10  ;;  %1757 = vmatpush3.bf16.msra.mxu0 %v2268_v25 }
  0xaf   : > { %1663 = vmatprep.subr.bf16.mxu1 %v1662_v39  ;;  %1759 = vmatprep.subr.bf16.mxu0 %v2288_v34 }
  0xb2   : > { %1665 = vmatpush3.bf16.msra.mxu1 %v1662_v39  ;;  %1761 = vmatpush3.bf16.msra.mxu0 %v2288_v34  ;;  %v1229_v34 = vld [vmem:[%s255_s19] ss:$0 sm:$0xff] }
  0xb3   : > { %1667 = vmatprep.subr.bf16.mxu1 %v1666_v13  ;;  %1763 = vmatprep.subr.bf16.mxu0 %v2323_v47 }
  0xb6   : > { %1669 = vmatpush3.bf16.msra.mxu1 %v1666_v13  ;;  %1765 = vmatpush3.bf16.msra.mxu0 %v2323_v47 }
  0xb7   : > { %1671 = vmatprep.subr.bf16.mxu1 %v1670_v17  ;;  %1767 = vmatprep.subr.bf16.mxu0 %v2340_v56 }
  0xba   : > { %1673 = vmatpush3.bf16.msra.mxu1 %v1670_v17  ;;  %1769 = vmatpush3.bf16.msra.mxu0 %v2340_v56 }
  0xbb   : > { %1675 = vmatprep.subr.bf16.mxu1 %v1674_v18  ;;  %1771 = vmatprep.subr.bf16.mxu0 %v2362_v63 }
  0xbe   : > { %1677 = vmatpush3.bf16.msra.mxu1 %v1674_v18  ;;  %1773 = vmatpush3.bf16.msra.mxu0 %v2362_v63 }
  0xc1   : > { %1463 = vmatmul.mubr.f32.vlgmr.msra.gmra.mrb[0].mxu1 %v2330_v52  ;;  %1577 = vmatmul.mubr.f32.vlgmr.msra.gmra.mrb[0].mxu0 %v2304_v41 }
  0xc2   : > { %1465 = vmatprep.mubr.f32.mxu1 %v2381_v6  ;;  %1579 = vmatprep.mubr.f32.mxu0 %v2356_v61 }
  0xc5   : > { %1466 = vmatmul.mubr.f32.gmra.mrb[2].mxu1 %v2396_v20  ;;  %1580 = vmatmul.mubr.f32.gmra.mrb[2].mxu0 %v2386_v11 }
 0x194   : > { %v1464_v23 = vpop.f32.mrb[0].mxu1  ;;  %v1578_v25 = vpop.f32.mrb[0].mxu0 }
 0x195   : > { %v1774_v41 = vadd.f32 %v1578_v25, %v1464_v23  ;;  %v679_v42 = vpop.f32.mrb[1].mxu1  ;;  %v1037_v43 = vpop.f32.mrb[1].mxu0 }
 0x196   : > { %v1775_v47 = vadd.f32 %v1037_v43, %v679_v42 }
 0x197   : > { %v1082_v50 = vadd.f32 %v1774_v41, %v1229_v34 }
 0x198   : > { %v1081_v52 = vadd.f32 %v1775_v47, %v1229_v34  ;;  %v1467_v56 = vpop.f32.mrb[2].mxu1  ;;  %v1581_v57 = vpop.f32.mrb[2].mxu0 }
 0x199   : > { %1086 = vst [vmem:[%s250_s11 + $0x8] sm:$0xff] %v1082_v50  ;;  %v1776_v60 = vadd.f32 %v1581_v57, %v1467_v56  ;;  %v693_v61 = vpop.f32.mrb[3].mxu1  ;;  %v1049_v63 = vpop.f32.mrb[3].mxu0 }
 0x19a   : > { %1085 = vst [vmem:[%s250_s11] sm:$0xff] %v1081_v52  ;;  %v1777_v4 = vadd.f32 %v1049_v63, %v693_v61 }
 0x19b   : > { %v1084_v5 = vadd.f32 %v1776_v60, %v1229_v34 }
 0x19c   : > { %v1083_v6 = vadd.f32 %v1777_v4, %v1229_v34 }
 0x19d   : > { %1088 = vst [vmem:[%s250_s11 + $0x18] sm:$0xff] %v1084_v5 }
 0x19e   : > { %1087 = vst [vmem:[%s250_s11 + $0x10] sm:$0xff] %v1083_v6 }
 0x19f   : > { %1944 = shalt.err (!%p1941_p1)
}
 0x1a0   : > { %s1945_s9 = scalar_lea.hbm %s2524_s7, 512  ;;  %s1949_s25 = scalar_lea.hbm %s2575_s3, 1536 }
 0x1a1   : > { %p1946_p5 = scmp.ne.s32.totalorder %s2524_s7, %s1945_s9  ;;  %p1950_p2 = scmp.lt.u32.totalorder %s2524_s7, %s2575_s3 }
 0x1a2   : > { %p1951_p8 = scmp.lt.u32.totalorder %s1949_s25, %s1945_s9  ;;  %p1953_p11 = scmp.lt.u32.totalorder %s1945_s9, %s2524_s7 }
 0x1a3   : > { %p1947_p7 = pnand %p1946_p5, %p2600_p4 }
 0x1a4   : > { %p1952_p9 = por %p1951_p8, %p1950_p2 }
 0x1a5   : > { %p1948_p12 = pneg %p1947_p7 }
 0x1a6   : > { %p1954_p13 = por %p1953_p11, %p1952_p9 }
 0x1a8   : > { %p1955_p0 = pnand %p1954_p13, %p1948_p12 }
 0x1aa   : > { %1958 = shalt.err (!%p1955_p0)
}
 0x1ab   : > { %s2025_s11 = smov 128   ;;  %s2026_s4 = smov 384  }
 0x1ac   : > { %s2027_s5 = smov 8  }
 0x1ad   : > { %1800 = dma.vmem_to_hbm [thread:$0]  (%p2600_p4), %s2519_s26, 512, %s2524_s7, %s1090_s15, %s2025_s11, %s2026_s4, %s2027_s5  }
 0x1ae PF: > { %p1817_p10 = scmp.ge.s32.totalorder %s2017_s17, 2  ;;  %s1120_s27 = sand.u32 1, %s1997_s12  }
 0x1af   : > { %p2601_p3 = scmp.ne.s32.totalorder %s2589_s24, 0  ;;  %s1121_s18 = scalar_lea.sflag [#allocation5], %s1120_s27 }
 0x1b1   : > { %p1811_p6 = pnand %p1817_p10, %p2601_p3 }
 0x1b3   : > { %1992 = dma.done.wait (!%p1811_p6), %s1121_s18, 512  }
 0x1b4   : > { %1994 = vsyncadd (!%p1811_p6), %s1121_s18, 4294966784  ;;  %s20_s17 = sadd.s32 1, %s2017_s17   ;;  %s2602_s12 = smov %s2001_s13 }
 0x1b5   : > { %p17_p1 = scmp.ge.s32.totalorder %s20_s17, 5   ;;  %s2603_s13 = smov %s2005_s14 }
 0x1b6   : > { %s2604_s14 = smov %s2161_s21  ;;  %s2605_s15 = smov %s2013_s16 }
 0x1b7   : > { %s2606_s16 = smov %s2608_s30  ;;  %19 = sbr.rel (!%p17_p1) target bundleno = 7 (0x7), region = 94 }
 0x1be   :  { %1126 = vsyncpa [#allocation4], 1 }
 0x1bf   :  { %1128 = vsyncpa [#allocation4 + $0x1], 1 }
 0x1c0   :  { %1129 = vsyncpa [#allocation7], 1 }
 0x1c1   :  { %1131 = vsyncpa [#allocation7 + $0x1], 1 }
 0x1c2   :  { %1132 = vsyncpa [#allocation5], 1 }
 0x1c3   :  { %1134 = vsyncpa [#allocation5 + $0x1], 1 }

</bundles_post_ra>
